<compile_context>
chip_gen: v6e
topology: v6e:2x2x1
jax: 0.10.0
libtpu: 0.0.40
codegen_flags: <defaults>
</compile_context>

<pallas_src>
import jax
import jax.numpy as jnp
from jax.experimental import pallas as pl
from jax.experimental.pallas import tpu as pltpu


def _cdiv(a: int, b: int) -> int:
    return (a + b - 1) // b


def _round_up(x: int, m: int) -> int:
    return ((x + m - 1) // m) * m


def _balanced_tile(dim: int, max_tile: int, align: int) -> int:
    """Tile size for `dim`.

    If the whole dim fits in one tile, use the full extent (a block equal to
    the full array dim is always legal and needs no padding).  Otherwise use
    balanced tiles aligned to `align`, so padding is < `align` per axis rather
    than up to a nearly-full tile (the old clamp-then-round behaviour).
    """
    if dim <= max_tile:
        return dim
    n_tiles = _cdiv(dim, max_tile)
    return _round_up(_cdiv(dim, n_tiles), align)


def _linrelu_kernel_f32out(x_ref, b_ref, w_ref, o_ref):
    # x_ref: (tm, tk)  b_ref: (1, tk)  w_ref: (tk, tn)  o_ref: (tm, tn) f32
    # The output block index_map ignores k, so o_ref stays resident in VMEM
    # across the K reduction: accumulate straight into it (no acc scratch).
    k = pl.program_id(2)

    @pl.when(k == 0)
    def _():
        o_ref[...] = jnp.zeros_like(o_ref)

    # In-kernel bias subtract — same rounding order as the PyTorch reference,
    # runs on the VPU under MXU slack, only a (1, tk) DMA per K step.
    xb = x_ref[...] - b_ref[...]
    o_ref[...] += jnp.dot(xb, w_ref[...], preferred_element_type=jnp.float32)

    @pl.when(k == pl.num_programs(2) - 1)
    def _():
        o_ref[...] = jnp.maximum(o_ref[...], 0.0)


def _linrelu_kernel_acc(x_ref, b_ref, w_ref, o_ref, acc_ref):
    # Generic-output variant: f32 VMEM accumulator + fused ReLU/cast epilogue.
    k = pl.program_id(2)

    @pl.when(k == 0)
    def _():
        acc_ref[...] = jnp.zeros_like(acc_ref)

    xb = x_ref[...] - b_ref[...]
    acc_ref[...] += jnp.dot(xb, w_ref[...], preferred_element_type=jnp.float32)

    @pl.when(k == pl.num_programs(2) - 1)
    def _():
        o_ref[...] = jnp.maximum(acc_ref[...], 0.0).astype(o_ref.dtype)


def linrelu(x: jax.Array, weights: jax.Array, bias: jax.Array, *,
            tm: int = 1024, tn: int = 1024, tk: int = 1024,
            compute_dtype=None) -> jax.Array:
    """Computes relu((x - bias) @ weights) with a Pallas TPU kernel.

    x:       (M, K)
    weights: (K, N)
    bias:    (K,)
    compute_dtype: optionally cast x/bias/weights (e.g. jnp.bfloat16) for the
                   MXU; accumulation stays f32.  For best perf store weights in
                   bf16 at init so the cast here is a no-op (avoids a per-call
                   full-weight HBM pass).
    returns  (M, N) in x.dtype
    """
    M, K = x.shape
    K2, N = weights.shape
    assert K == K2 and bias.shape == (K,)
    out_dtype = x.dtype

    if compute_dtype is not None:
        x = x.astype(compute_dtype)
        bias = bias.astype(compute_dtype)
        if weights.dtype != compute_dtype:
            weights = weights.astype(compute_dtype)

    in_itemsize = jnp.dtype(x.dtype).itemsize
    # Sublane packing per compute dtype: 8 (f32), 16 (bf16), 32 (int8/fp8).
    sublane = max(8, 32 // in_itemsize)

    tm_ = _balanced_tile(M, tm, sublane)
    tn_ = _balanced_tile(N, tn, 128)
    tk_ = _balanced_tile(K, tk, 128)

    Mp = _round_up(M, tm_)
    Np = _round_up(N, tn_)
    Kp = _round_up(K, tk_)

    # Megacore: with a single M tile (the common small-batch LinReLU case),
    # split N into >= 2 parallel tiles so both TensorCores (v7x) get work.
    if Mp // tm_ == 1 and Np // tn_ == 1 and Np >= 256 and Np % 256 == 0:
        tn_ = Np // 2

    # Pad only axes that actually need it; with balanced / full-extent tiles
    # the weights are only padded when K or N exceed a tile AND are ragged,
    # and then by < 128 per axis (not a nearly-full tile, no big extra HBM pass).
    xp = x if (Mp, Kp) == (M, K) else jnp.pad(x, ((0, Mp - M), (0, Kp - K)))
    wp = weights if (Kp, Np) == (K, N) else jnp.pad(weights, ((0, Kp - K), (0, Np - N)))
    bp = bias if Kp == K else jnp.pad(bias, (0, Kp - K))
    bp = bp.reshape(1, Kp)

    grid = (Mp // tm_, Np // tn_, Kp // tk_)

    f32_out = (out_dtype == jnp.float32)
    kernel = _linrelu_kernel_f32out if f32_out else _linrelu_kernel_acc
    scratch_shapes = [] if f32_out else [pltpu.VMEM((tm_, tn_), jnp.float32)]

    # VMEM budget: double-buffered x / bias / W / out (+ acc), plus headroom.
    w_itemsize = jnp.dtype(wp.dtype).itemsize
    o_itemsize = jnp.dtype(out_dtype).itemsize
    footprint = (2 * tm_ * tk_ * in_itemsize
                 + 2 * tk_ * in_itemsize
                 + 2 * tk_ * tn_ * w_itemsize
                 + 2 * tm_ * tn_ * o_itemsize
                 + (0 if f32_out else tm_ * tn_ * 4))
    # ~28 MiB at default 1024 f32 tiles: safe on v5e/v6e (128 MiB) and within
    # v7x's 64 MiB per-TC VMEM.  Raise tiles only after re-deriving this cap.
    vmem_limit = int(min(max(footprint + (16 << 20), 32 << 20), 128 << 20))

    out = pl.pallas_call(
        kernel,
        out_shape=jax.ShapeDtypeStruct((Mp, Np), out_dtype),
        grid_spec=pltpu.PrefetchScalarGridSpec(
            num_scalar_prefetch=0,
            grid=grid,
            in_specs=[
                pl.BlockSpec((tm_, tk_), lambda i, j, k: (i, k)),  # x tile
                pl.BlockSpec((1, tk_),   lambda i, j, k: (0, k)),  # bias row
                pl.BlockSpec((tk_, tn_), lambda i, j, k: (k, j)),  # weight tile (streamed)
            ],
            out_specs=pl.BlockSpec((tm_, tn_), lambda i, j, k: (i, j)),
            scratch_shapes=scratch_shapes,
        ),
        compiler_params=pltpu.CompilerParams(
            # M and N parallel (megacore-shardable), K is the reduction axis.
            dimension_semantics=("parallel", "parallel", "arbitrary"),
            vmem_limit_bytes=vmem_limit,
        ),
    )(xp, bp, wp)

    if (Mp, Np) != (M, N):
        out = out[:M, :N]
    return out


def _reference(x, weights, bias):
    return jnp.maximum((x - bias[None, :]) @ weights, 0.0)


if __name__ == "__main__":
    # Small shapes consistent with the module: batch=16, in_features=32, out_features=64.
    batch, in_features, out_features = 16, 32, 64

    key = jax.random.PRNGKey(0)
    kx, kw, kb = jax.random.split(key, 3)

    # Deterministic parameter init mirroring LinReLU.__init__:
    #   weights: xavier_uniform_  -> U(-a, a), a = sqrt(6 / (fan_in + fan_out))
    #   bias:    trunc_normal_(std=0.5), truncated to +/- 2 std
    a = jnp.sqrt(6.0 / (in_features + out_features))
    weights = jax.random.uniform(
        kw, (in_features, out_features), minval=-a, maxval=a, dtype=jnp.float32
    )
    bias = 0.5 * jax.random.truncated_normal(
        kb, -2.0, 2.0, (in_features,), dtype=jnp.float32
    )

    x = jax.random.normal(kx, (batch, in_features), dtype=jnp.float32)

    out = linrelu(x, weights, bias)
    out = jax.block_until_ready(out)

    ref = _reference(x, weights, bias)
    assert out.shape == (batch, out_features)
    # In-kernel (x - b) subtract matches the reference rounding order; allow
    # tiny drift from MXU f32 multi-pass accumulation vs XLA default matmul.
    assert jnp.allclose(out, ref, atol=1e-4, rtol=1e-4), "mismatch vs reference"

    print("KERNEL_OK")
</pallas_src>

<mosaic_0001>
module attributes {stable_mosaic.version = 11 : i64} {
  func.func @_linrelu_kernel_f32out(%arg0: i32, %arg1: i32, %arg2: i32, %arg3: memref<16x32xf32, #tpu.memory_space<vmem>>, %arg4: memref<1x32xf32, #tpu.memory_space<vmem>>, %arg5: memref<32x64xf32, #tpu.memory_space<vmem>>, %arg6: memref<16x64xf32, #tpu.memory_space<vmem>>) attributes {dimension_semantics = [#tpu.dimension_semantics<parallel>, #tpu.dimension_semantics<parallel>, #tpu.dimension_semantics<arbitrary>], iteration_bounds = array<i64: 1, 1, 1>, scalar_prefetch = 0 : i64, scratch_operands = 0 : i64, tpu.core_type = #tpu.core_type<tc>, window_params = [{transform_indices = @transform_0, window_bounds = array<i64: 16, 32>}, {transform_indices = @transform_1, window_bounds = array<i64: 1, 32>}, {transform_indices = @transform_2, window_bounds = array<i64: 32, 64>}, {transform_indices = @transform_3, window_bounds = array<i64: 16, 64>}]} {
    %c0_i32 = arith.constant 0 : i32
    %0 = arith.cmpi eq, %arg2, %c0_i32 : i32
    %1 = arith.extui %0 : i1 to i32
    %c0_i32_0 = arith.constant 0 : i32
    %2 = arith.cmpi ne, %1, %c0_i32_0 : i32
    scf.if %2 {
      %cst_12 = arith.constant 0.000000e+00 : f32
      %15 = vector.broadcast %cst_12 : f32 to vector<16x64xf32>
      %c0_13 = arith.constant 0 : index
      %c0_14 = arith.constant 0 : index
      %16 = vector.load %arg6[%c0_13, %c0_14] : memref<16x64xf32, #tpu.memory_space<vmem>>, vector<16x64xf32>
      tpu.vector_store %arg6[%c0_13, %c0_14], %15 {strides = array<i32>} : memref<16x64xf32, #tpu.memory_space<vmem>>, vector<16x64xf32>,
    } else {
    }
    %c0 = arith.constant 0 : index
    %c0_1 = arith.constant 0 : index
    %3 = vector.load %arg3[%c0, %c0_1] : memref<16x32xf32, #tpu.memory_space<vmem>>, vector<16x32xf32>
    %c0_2 = arith.constant 0 : index
    %c0_3 = arith.constant 0 : index
    %4 = vector.load %arg4[%c0_2, %c0_3] : memref<1x32xf32, #tpu.memory_space<vmem>>, vector<1x32xf32>
    %5 = vector.broadcast %4 : vector<1x32xf32> to vector<16x32xf32>
    %6 = arith.subf %3, %5 : vector<16x32xf32>
    %c0_4 = arith.constant 0 : index
    %c0_5 = arith.constant 0 : index
    %7 = vector.load %arg6[%c0_4, %c0_5] : memref<16x64xf32, #tpu.memory_space<vmem>>, vector<16x64xf32>
    %c0_6 = arith.constant 0 : index
    %c0_7 = arith.constant 0 : index
    %8 = vector.load %arg5[%c0_6, %c0_7] : memref<32x64xf32, #tpu.memory_space<vmem>>, vector<32x64xf32>
    %cst = arith.constant dense<0.000000e+00> : vector<16x64xf32>
    %9 = tpu.matmul %6, %8, %cst {dimension_numbers = #tpu.dot_dimension_numbers<[1], [0], [0], [1], [0, 0, 1, 1], [], []>} : vector<16x32xf32>, vector<32x64xf32>, vector<16x64xf32> -> vector<16x64xf32>
    %10 = arith.addf %7, %9 : vector<16x64xf32>
    %c0_8 = arith.constant 0 : index
    %c0_9 = arith.constant 0 : index
    %11 = vector.load %arg6[%c0_8, %c0_9] : memref<16x64xf32, #tpu.memory_space<vmem>>, vector<16x64xf32>
    tpu.vector_store %arg6[%c0_8, %c0_9], %10 {strides = array<i32>} : memref<16x64xf32, #tpu.memory_space<vmem>>, vector<16x64xf32>,
    %c0_i32_10 = arith.constant 0 : i32
    %12 = arith.cmpi eq, %arg2, %c0_i32_10 : i32
    %13 = arith.extui %12 : i1 to i32
    %c0_i32_11 = arith.constant 0 : i32
    %14 = arith.cmpi ne, %13, %c0_i32_11 : i32
    scf.if %14 {
      %c0_12 = arith.constant 0 : index
      %c0_13 = arith.constant 0 : index
      %15 = vector.load %arg6[%c0_12, %c0_13] : memref<16x64xf32, #tpu.memory_space<vmem>>, vector<16x64xf32>
      %cst_14 = arith.constant 0.000000e+00 : f32
      %16 = vector.broadcast %cst_14 : f32 to vector<16x64xf32>
      %17 = arith.maximumf %15, %16 : vector<16x64xf32>
      %c0_15 = arith.constant 0 : index
      %c0_16 = arith.constant 0 : index
      %18 = vector.load %arg6[%c0_15, %c0_16] : memref<16x64xf32, #tpu.memory_space<vmem>>, vector<16x64xf32>
      tpu.vector_store %arg6[%c0_15, %c0_16], %17 {strides = array<i32>} : memref<16x64xf32, #tpu.memory_space<vmem>>, vector<16x64xf32>,
    } else {
    }
    return
  }
  func.func @transform_0(%arg0: i32, %arg1: i32, %arg2: i32) -> (i32, i32) {
    %c0_i32 = arith.constant 0 : i32
    return %arg0, %arg2 : i32, i32
  }
  func.func @transform_1(%arg0: i32, %arg1: i32, %arg2: i32) -> (i32, i32) {
    %c0_i32 = arith.constant 0 : i32
    %c0_i32_0 = arith.constant 0 : i32
    return %c0_i32, %arg2 : i32, i32
  }
  func.func @transform_2(%arg0: i32, %arg1: i32, %arg2: i32) -> (i32, i32) {
    %c0_i32 = arith.constant 0 : i32
    return %arg2, %arg1 : i32, i32
  }
  func.func @transform_3(%arg0: i32, %arg1: i32, %arg2: i32) -> (i32, i32) {
    %c0_i32 = arith.constant 0 : i32
    return %arg0, %arg1 : i32, i32
  }
}

</mosaic_0001>

<bundles_post_ra>
// kernel: tpu_custom_call.1
= control target key start
LH: loop header
LB: loop body
LE: loop exit
PB: predicated region body
PF: predicated region fallthrough
CT: control target
= control target key end

     0   :  { %8 = vsyncpa [#allocation3], 0  ;;  %s326_s0 = inlined_call_operand.hbm [shape: f32[16,32], index: 0, kind: input, shape index: {}]   ;;  %s327_s1 = inlined_call_operand.vmem [shape: f32[1,32], index: 1, kind: input, shape index: {}]   ;;  %s328_s2 = inlined_call_operand.hbm [shape: f32[32,64], index: 2, kind: input, shape index: {}]   ;;  %s329_s3 = inlined_call_operand.hbm [shape: f32[16,64], index: 3, kind: output, shape index: {}]  }
   0x1   :  { %9 = vsyncpa [#allocation6], 0 }
   0x2   :  { %10 = vsyncpa [#allocation4], 0  ;;  %s273_s12 = smov [#allocation2]  }
   0x3   :  { %s16_s13 = sshll.u32 %s273_s12, 4  ;;  %s17_s13 = int_to_ptr.vmem [resolvable:$true] %s16_s13 }
   0x4   :  { %s215_s14 = scalar_lea.vmem %s17_s13, 256  ;;  %p220_p1 = scmp.lt.s32.totalorder %s17_s13, %s17_s13 }
   0x5   :  { %p216_p0 = scmp.ne.s32.totalorder %s17_s13, %s215_s14  ;;  %p221_p2 = scmp.lt.s32.totalorder %s215_s14, %s215_s14 }
   0x7   :  { %p222_p3 = por %p221_p2, %p220_p1 }
   0x9   :  { %p223_p4 = pnand %p222_p3, %p216_p0 }
   0xb   :  { %226 = shalt.err (!%p223_p4)
}
   0xc   :  { %s274_s15 = smov 128   ;;  %s275_s16 = smov 8  }
   0xd   :  { %22 = dma.hbm_to_vmem [thread:$0]  %s326_s0, 256, %s17_s13, [#allocation3], %s274_s15, %s274_s15, %s275_s16  }
   0xe   :  { %s276_s19 = smov [#allocation5]  }
   0xf   :  { %s30_s20 = sshll.u32 %s276_s19, 4  ;;  %s31_s20 = int_to_ptr.vmem [resolvable:$true] %s30_s20 }
  0x10   :  { %s235_s21 = scalar_lea.vmem %s31_s20, 512  ;;  %p240_p6 = scmp.lt.s32.totalorder %s31_s20, %s31_s20 }
  0x11   :  { %p236_p5 = scmp.ne.s32.totalorder %s31_s20, %s235_s21  ;;  %p241_p7 = scmp.lt.s32.totalorder %s235_s21, %s235_s21 }
  0x13   :  { %p242_p8 = por %p241_p7, %p240_p6 }
  0x15   :  { %p243_p9 = pnand %p242_p8, %p236_p5 }
  0x17   :  { %246 = shalt.err (!%p243_p9)
}
  0x18   :  { %36 = dma.hbm_to_vmem [thread:$0]  %s328_s2, 512, %s31_s20, [#allocation6], %s274_s15, %s274_s15, %s275_s16  }
  0x19   :  { %267 = dma.done.wait [#allocation3], 256  }
  0x1a   :  { %268 = vsyncadd [#allocation3], 4294967040 }
  0x1b   :  { %269 = dma.done.wait [#allocation6], 512  }
  0x1c   :  { %270 = vsyncadd [#allocation6], 4294966784  ;;  %vm47_vm0 = vcmask 523264   ;;  %v277_v0 = vmov 0.0   ;;  %v66_v1 = vld [vmem:[#allocation5 + $0x18] sm:$0xff]  ;;  %v65_v2 = vld [vmem:[#allocation5 + $0x10] sm:$0xff] }
  0x1d   :  { %49 = vst.msk [vmem:[#allocation7 + $0x8] sm:$0xff] %vm47_vm0, %v277_v0  ;;  %48 = vst.msk [vmem:[#allocation7] sm:$0xff] %vm47_vm0, %v277_v0  ;;  %190 = vmatprep.subr.mxu0 %v66_v1  ;;  %v50_v3 = vld [vmem:[#allocation2] sm:$0xff]  ;;  %v64_v4 = vld [vmem:[#allocation5 + $0x8] sm:$0xff]  ;;  %vm67_vm1 = vcmask 261120  }
  0x1e   :  { %191 = vmatpush3.msra.mxu0 %v66_v1  ;;  %v51_v5 = vld [vmem:[#allocation2 + $0x8] sm:$0xff]  ;;  %v181_v6 = vld [vmem:[%s327_s1] ss:$0 sm:$0xff]  ;;  %v63_v8 = vld [vmem:[#allocation5] sm:$0xff]  ;;  %s278_s1 = smov [#allocation7]  }
  0x1f   :  { %192 = vmatprep.subr.mxu0 %v65_v2  ;;  %v59_v7 = vsub.f32 %v50_v3, %v181_v6  ;;  %v60_v9 = vsub.f32 %v51_v5, %v181_v6  ;;  %s168_s2 = sshll.u32 %s278_s1, 4  ;;  %s169_s2 = int_to_ptr.vmem [resolvable:$true] %s168_s2 }
  0x20   :  { %193 = vmatpush3.msra.mxu0 %v65_v2  ;;  %s247_s25 = scalar_lea.vmem %s169_s2, 256  ;;  %p252_p11 = scmp.lt.s32.totalorder %s169_s2, %s169_s2 }
  0x21   :  { %194 = vmatprep.subr.mxu0 %v64_v4  ;;  %198 = vmatprep.mubr.msk.f32.mxu0 %vm67_vm1, %v59_v7  ;;  %p248_p10 = scmp.ne.s32.totalorder %s169_s2, %s247_s25  ;;  %p253_p12 = scmp.lt.s32.totalorder %s247_s25, %s247_s25 }
  0x22   :  { %195 = vmatpush3.msra.mxu0 %v64_v4 }
  0x23   :  { %196 = vmatprep.subr.mxu0 %v63_v8  ;;  %p254_p13 = por %p253_p12, %p252_p11 }
  0x24   :  { %197 = vmatpush3.msra.mxu0 %v63_v8  ;;  %v62_v10 = vld [vmem:[#allocation7 + $0x8] sm:$0xff]  ;;  %v61_v12 = vld [vmem:[#allocation7] sm:$0xff] }
  0x25   :  { %199 = vmatmul.mubr.msk.f32.vlgmr.msra.gmra.mxu0 %vm67_vm1, %v60_v9  ;;  %p255_p0 = pnand %p254_p13, %p248_p10 }
  0xe5   :  { %v200_v11 = vpop.f32.mrf.mxu0 }
  0xe6   :  { %v150_v13 = vadd.f32 %v200_v11, %v62_v10 }
  0xe7   :  { %v140_v14 = vpop.f32.mrf.mxu0 }
  0xe8   :  { %153 = vst.msk [vmem:[#allocation7 + $0x8] sm:$0xff] %vm47_vm0, %v150_v13  ;;  %v149_v15 = vadd.f32 %v140_v14, %v61_v12 }
  0xea   :  { %152 = vst.msk [vmem:[#allocation7] sm:$0xff] %vm47_vm0, %v149_v15 }
  0xef   :  { %v158_v16 = vld [vmem:[#allocation7 + $0x8] sm:$0xff] }
  0xf0   :  { %v160_v17 = vmax.f32 %v158_v16, 0.0 }
  0xf1   :  { %v157_v18 = vld [vmem:[#allocation7] sm:$0xff] }
  0xf2   :  { %v159_v19 = vmax.f32 %v157_v18, 0.0  ;;  %162 = vst.msk [vmem:[#allocation7 + $0x8] sm:$0xff] %vm47_vm0, %v160_v17 }
  0xf4   :  { %161 = vst.msk [vmem:[#allocation7] sm:$0xff] %vm47_vm0, %v159_v19 }
  0xf5   :  { %258 = shalt.err (!%p255_p0)
}
  0xf6   :  { %174 = dma.vmem_to_hbm [thread:$0]  %s169_s2, 256, %s329_s3, [#allocation4], %s274_s15, %s274_s15, %s275_s16  }
  0xf7   :  { %271 = dma.done.wait [#allocation4], 256  }
  0xf8   :  { %272 = vsyncadd [#allocation4], 4294967040 }
  0xf9   :  { %178 = vsyncpa [#allocation3], 1 }
  0xfa   :  { %179 = vsyncpa [#allocation6], 1 }
  0xfb   :  { %180 = vsyncpa [#allocation4], 1 }

</bundles_post_ra>
